<compile_context>
chip_gen: v7x
topology: tpu7x:2x2x1
jax: 0.10.0
libtpu: 0.0.40
codegen_flags: <defaults>
</compile_context>

<pallas_src>
import jax
import jax.numpy as jnp
from jax.experimental import pallas as pl
from jax.experimental.pallas import tpu as pltpu


def trigger_kernel(idx_ref, enc_ref, w_ref, b_ref, out_ref):
    # idx_ref : VMEM [BS, 1] int32  (flat gather index: b*S + words_index[b, s])
    # enc_ref : VMEM [BS, H] f32    (encoder output, batch/seq flattened)
    # w_ref   : VMEM [H, Tp] f32    (fc_trigger weight, zero-padded to Tp lanes)
    # b_ref   : VMEM [1, Tp] f32    (fc_trigger bias, zero-padded)
    # out_ref : VMEM [BS, Tp] f32   (gathered trigger logits, padded)

    # fc_trigger applied to ALL rows first (gather commutes with the Linear).
    full = jnp.dot(enc_ref[...], w_ref[...], preferred_element_type=jnp.float32)
    full = full + b_ref[...]

    # Row selection of the tiny [BS, Tp] result via a one-hot matmul
    # (exact: rows multiplied by 1.0, all other terms are exactly 0.0).
    bs = out_ref.shape[0]
    col = jax.lax.broadcasted_iota(jnp.int32, (bs, bs), 1)
    onehot = (idx_ref[...] == col).astype(jnp.float32)      # [BS, BS]
    gathered = jnp.dot(onehot, full, preferred_element_type=jnp.float32)

    out_ref[...] = gathered.astype(out_ref.dtype)


def trigger_head(enc, words_index, w, bias):
    """enc: [B,S,H] f32, words_index: [B,S] int32, w: [H,T] f32, bias: [T] f32."""
    B, S, H = enc.shape
    T = w.shape[1]
    BS = B * S
    Tp = 128 * pl.cdiv(T, 128)  # lane-dense output width

    # Zero-pad the trigger dim to a full 128-lane multiple (sliced back below).
    w_pad = jnp.zeros((H, Tp), jnp.float32).at[:, :T].set(w)
    bias_pad = jnp.zeros((1, Tp), jnp.float32).at[:, :T].set(bias)

    enc2d = enc.reshape(BS, H)
    # x[b] = index_select(x[b], 0, words_index[b])  ->  flat row indices.
    flat_idx = (jnp.arange(B, dtype=jnp.int32)[:, None] * S
                + words_index.astype(jnp.int32)).reshape(BS, 1)

    vmem = pltpu.MemorySpace.VMEM
    logits_pad = pl.pallas_call(
        trigger_kernel,
        out_shape=jax.ShapeDtypeStruct((BS, Tp), jnp.float32),
        in_specs=[
            pl.BlockSpec(memory_space=vmem),  # flat_idx
            pl.BlockSpec(memory_space=vmem),  # enc2d
            pl.BlockSpec(memory_space=vmem),  # w_pad
            pl.BlockSpec(memory_space=vmem),  # bias_pad
        ],
        out_specs=pl.BlockSpec(memory_space=vmem),
    )(flat_idx, enc2d, w_pad, bias_pad)

    logits = logits_pad[:, :T].reshape(B, S, T)
    hat = jnp.argmax(logits, axis=-1).astype(jnp.int32)  # trivial T-wide reduce
    return logits, hat  # [B,S,T], [B,S]


def bert_stub_encode(tokens, segments, tok_emb, seg_emb, pos_emb):
    # Deterministic stand-in for BertModel(...) -> last encoded layer [B,S,H].
    S = tokens.shape[1]
    return tok_emb[tokens] + seg_emb[segments] + pos_emb[None, :S, :]


def net_forward(tokens_x_2d, mask_2d, segment_2d, words_index, params):
    enc = bert_stub_encode(tokens_x_2d, segment_2d,
                           params["tok_emb"], params["seg_emb"], params["pos_emb"])
    trigger_logits, trigger_hat_2d = trigger_head(
        enc, words_index, params["fc_w"], params["fc_b"])
    return trigger_logits, trigger_hat_2d


if __name__ == "__main__":
    B, S = 2, 8
    HIDDEN = 768
    VOCAB = 32
    TRIGGER_SIZE = 16

    key = jax.random.PRNGKey(0)
    k1, k2, k3, k4, k5, k6, k7 = jax.random.split(key, 7)

    params = {
        "tok_emb": jax.random.normal(k1, (VOCAB, HIDDEN), jnp.float32) * 0.02,
        "seg_emb": jax.random.normal(k2, (2, HIDDEN), jnp.float32) * 0.02,
        "pos_emb": jax.random.normal(k3, (S, HIDDEN), jnp.float32) * 0.02,
        # nn.Linear(hidden_size, trigger_size): weight [T, H] in torch; stored as [H, T] here.
        "fc_w": jax.random.normal(k4, (HIDDEN, TRIGGER_SIZE), jnp.float32) * 0.02,
        "fc_b": jax.random.normal(k5, (TRIGGER_SIZE,), jnp.float32) * 0.02,
    }

    tokens_x_2d = jax.random.randint(k6, (B, S), 0, VOCAB, dtype=jnp.int32)
    segment_2d = jnp.zeros((B, S), jnp.int32)
    mask_2d = jnp.ones((B, S), jnp.int32)
    words_index = jax.random.randint(k7, (B, S), 0, S, dtype=jnp.int32)

    logits, hat = net_forward(tokens_x_2d, mask_2d, segment_2d, words_index, params)
    jax.block_until_ready((logits, hat))

    assert logits.shape == (B, S, TRIGGER_SIZE) and logits.dtype == jnp.float32
    assert hat.shape == (B, S) and hat.dtype == jnp.int32

    # Reference check in plain JAX.
    enc_ref = bert_stub_encode(tokens_x_2d, segment_2d,
                               params["tok_emb"], params["seg_emb"], params["pos_emb"])
    gathered = jnp.take_along_axis(enc_ref, words_index[..., None], axis=1)
    ref_logits = gathered @ params["fc_w"] + params["fc_b"]
    ref_hat = jnp.argmax(ref_logits, axis=-1).astype(jnp.int32)
    assert jnp.allclose(logits, ref_logits, atol=1e-5, rtol=1e-5)
    assert jnp.array_equal(hat, ref_hat)

    print("KERNEL_OK")
</pallas_src>

<mosaic_0001>
module attributes {stable_mosaic.version = 11 : i64} {
  func.func @trigger_kernel(%arg0: memref<16x1xi32, #tpu.memory_space<vmem>>, %arg1: memref<16x768xf32, #tpu.memory_space<vmem>>, %arg2: memref<768x128xf32, #tpu.memory_space<vmem>>, %arg3: memref<1x128xf32, #tpu.memory_space<vmem>>, %arg4: memref<16x128xf32, #tpu.memory_space<vmem>>) attributes {dimension_semantics = [], scalar_prefetch = 0 : i64, scratch_operands = 0 : i64, tpu.core_type = #tpu.core_type<tc>} {
    %c0 = arith.constant 0 : index
    %c0_0 = arith.constant 0 : index
    %0 = vector.load %arg1[%c0, %c0_0] : memref<16x768xf32, #tpu.memory_space<vmem>>, vector<16x768xf32>
    %c0_1 = arith.constant 0 : index
    %c0_2 = arith.constant 0 : index
    %1 = vector.load %arg2[%c0_1, %c0_2] : memref<768x128xf32, #tpu.memory_space<vmem>>, vector<768x128xf32>
    %cst = arith.constant dense<0.000000e+00> : vector<16x128xf32>
    %2 = tpu.matmul %0, %1, %cst {dimension_numbers = #tpu.dot_dimension_numbers<[1], [0], [0], [1], [0, 0, 1, 1], [], []>} : vector<16x768xf32>, vector<768x128xf32>, vector<16x128xf32> -> vector<16x128xf32>
    %c0_3 = arith.constant 0 : index
    %c0_4 = arith.constant 0 : index
    %3 = vector.load %arg3[%c0_3, %c0_4] : memref<1x128xf32, #tpu.memory_space<vmem>>, vector<1x128xf32>
    %4 = vector.broadcast %3 : vector<1x128xf32> to vector<16x128xf32>
    %5 = arith.addf %2, %4 : vector<16x128xf32>
    %6 = tpu.iota {dimensions = array<i32: 1>} : vector<16x16xi32>
    %c0_5 = arith.constant 0 : index
    %c0_6 = arith.constant 0 : index
    %7 = vector.load %arg0[%c0_5, %c0_6] : memref<16x1xi32, #tpu.memory_space<vmem>>, vector<16x1xi32>
    %8 = vector.broadcast %7 : vector<16x1xi32> to vector<16x16xi32>
    %9 = arith.cmpi eq, %8, %6 : vector<16x16xi32>
    %10 = arith.extui %9 : vector<16x16xi1> to vector<16x16xi32>
    %11 = arith.sitofp %10 : vector<16x16xi32> to vector<16x16xf32>
    %cst_7 = arith.constant dense<0.000000e+00> : vector<16x128xf32>
    %12 = tpu.matmul %11, %5, %cst_7 {dimension_numbers = #tpu.dot_dimension_numbers<[1], [0], [0], [1], [0, 0, 1, 1], [], []>} : vector<16x16xf32>, vector<16x128xf32>, vector<16x128xf32> -> vector<16x128xf32>
    %c0_8 = arith.constant 0 : index
    %c0_9 = arith.constant 0 : index
    %13 = vector.load %arg4[%c0_8, %c0_9] : memref<16x128xf32, #tpu.memory_space<vmem>>, vector<16x128xf32>
    tpu.vector_store %arg4[%c0_8, %c0_9], %12 {strides = array<i32>} : memref<16x128xf32, #tpu.memory_space<vmem>>, vector<16x128xf32>,
    return
  }
}

</mosaic_0001>

<bundles_post_ra>
// kernel: tpu_custom_call.1
= control target key start
LH: loop header
LB: loop body
LE: loop exit
PB: predicated region body
PF: predicated region fallthrough
CT: control target
= control target key end

     0   :  { %9 = vsyncpa [#allocation3], 0  ;;  %s903_s0 = inlined_call_operand.vmem [shape: s32[16,1], index: 0, kind: input, shape index: {}]   ;;  %s904_s1 = inlined_call_operand.hbm [shape: f32[16,768], index: 1, kind: input, shape index: {}]   ;;  %s905_s2 = inlined_call_operand.hbm [shape: f32[768,128], index: 2, kind: input, shape index: {}]   ;;  %s906_s3 = inlined_call_operand.vmem [shape: f32[1,128], index: 3, kind: input, shape index: {}]   ;;  %s907_s4 = inlined_call_operand.hbm [shape: f32[16,128], index: 4, kind: output, shape index: {}]  }
   0x1   :  { %10 = vsyncpa [#allocation6], 0 }
   0x2   :  { %11 = vsyncpa [#allocation4], 0  ;;  %s816_s15 = smov [#allocation2]   ;;  %s744_s19 = scalar_lea.hbm %s904_s1, 1536 }
   0x3   :  { %s19_s16 = sshll.u32 %s816_s15, 4  ;;  %p745_p0 = scmp.ne.s32.totalorder %s904_s1, %s744_s19  ;;  %s20_s16 = int_to_ptr.vmem [resolvable:$true] %s19_s16 }
   0x4   :  { %p748_p1 = scmp.lt.u32.totalorder %s744_s19, %s904_s1 }
   0x6   :  { %p750_p2 = pnand %p748_p1, %p745_p0 }
   0x8   :  { %753 = shalt.err (!%p750_p2)
}
   0x9   :  { %s754_s24 = scalar_lea.vmem %s20_s16, 1536  ;;  %p759_p4 = scmp.lt.s32.totalorder %s20_s16, %s20_s16 }
   0xa   :  { %p755_p3 = scmp.ne.s32.totalorder %s20_s16, %s754_s24  ;;  %p760_p5 = scmp.lt.s32.totalorder %s754_s24, %s754_s24 }
   0xc   :  { %p761_p6 = por %p760_p5, %p759_p4 }
   0xe   :  { %p762_p7 = pnand %p761_p6, %p755_p3 }
  0x10   :  { %765 = shalt.err (!%p762_p7)
}
  0x11   :  { %s817_s25 = smov 768   ;;  %s818_s26 = smov 48  }
  0x12   :  { %25 = dma.hbm_to_vmem [thread:$0]  %s904_s1, 1536, %s20_s16, [#allocation3], %s817_s25, %s817_s25, %s818_s26  }
  0x13   :  { %s819_s29 = smov [#allocation5]   ;;  %s766_s7 = scalar_lea.hbm %s905_s2, 12288 }
  0x14   :  { %s31_s30 = sshll.u32 %s819_s29, 4  ;;  %p767_p8 = scmp.ne.s32.totalorder %s905_s2, %s766_s7  ;;  %s32_s30 = int_to_ptr.vmem [resolvable:$true] %s31_s30 }
  0x15   :  { %p770_p9 = scmp.lt.u32.totalorder %s766_s7, %s905_s2 }
  0x17   :  { %p772_p10 = pnand %p770_p9, %p767_p8 }
  0x19   :  { %775 = shalt.err (!%p772_p10)
}
  0x1a   :  { %s776_s12 = scalar_lea.vmem %s32_s30, 12288  ;;  %p781_p12 = scmp.lt.s32.totalorder %s32_s30, %s32_s30 }
  0x1b   :  { %p777_p11 = scmp.ne.s32.totalorder %s32_s30, %s776_s12  ;;  %p782_p13 = scmp.lt.s32.totalorder %s776_s12, %s776_s12 }
  0x1d   :  { %p783_p0 = por %p782_p13, %p781_p12 }
  0x1f   :  { %p784_p1 = pnand %p783_p0, %p777_p11 }
  0x21   :  { %787 = shalt.err (!%p784_p1)
}
  0x22   :  { %s820_s1 = smov 128   ;;  %s821_s13 = smov 8  }
  0x23   :  { %37 = dma.hbm_to_vmem [thread:$0]  %s905_s2, 12288, %s32_s30, [#allocation6], %s820_s1, %s820_s1, %s821_s13  }
  0x24   :  { %810 = dma.done.wait [#allocation3], 1536  }
  0x25   :  { %811 = vsyncadd [#allocation3], 4294965760 }
  0x26   :  { %812 = dma.done.wait [#allocation6], 12288  }
  0x27   :  { %813 = vsyncadd [#allocation6], 4294955008  ;;  %v822_v0 = vmov 0   ;;  %v74_v1 = vld [vmem:[#allocation5 + $0x80] sm:$0xff]  ;;  %v75_v2 = vld [vmem:[#allocation5 + $0x88] sm:$0xff]  ;;  %vm402_vm0 = vcmask 130048  }
  0x28   :  { %743 = vset.pattern.permute.xlu0 %v822_v0  ;;  %v58_v3 = vld [vmem:[#allocation5] sm:$0xff]  ;;  %v634_v4 = vpack.c.bf16 %v75_v2, %v74_v1  ;;  %v59_v5 = vld [vmem:[#allocation5 + $0x8] sm:$0xff]  ;;  %v76_v12 = vld [vmem:[#allocation5 + $0x90] sm:$0xff] }
  0x29   :  { %v106_v6 = vld [vmem:[#allocation5 + $0x180] sm:$0xff]  ;;  %v107_v7 = vld [vmem:[#allocation5 + $0x188] sm:$0xff]  ;;  %v636_v8 = vpack.c.bf16 %v59_v5, %v58_v3  ;;  %v77_v14 = vld [vmem:[#allocation5 + $0x98] sm:$0xff] }
  0x2a   :  { %v666_v9 = vpack.c.bf16 %v107_v7, %v106_v6  ;;  %v90_v10 = vld [vmem:[#allocation5 + $0x100] sm:$0xff]  ;;  %v91_v11 = vld [vmem:[#allocation5 + $0x108] sm:$0xff]  ;;  %635 = vmatprep.subr.bf16.mxu0 %v634_v4  ;;  %v60_v15 = vld [vmem:[#allocation5 + $0x10] sm:$0xff]  ;;  %v638_v17 = vpack.c.bf16 %v77_v14, %v76_v12 }
  0x2b   :  { %v668_v13 = vpack.c.bf16 %v91_v11, %v90_v10  ;;  %v61_v16 = vld [vmem:[#allocation5 + $0x18] sm:$0xff]  ;;  %637 = vmatpush3.bf16.msra.mxu0 %v636_v8  ;;  %v108_v19 = vld [vmem:[#allocation5 + $0x190] sm:$0xff]  ;;  %v78_v24 = vld [vmem:[#allocation5 + $0xa0] sm:$0xff] }
  0x2c   :  { %667 = vmatprep.subr.bf16.mxu1 %v666_v9  ;;  %v640_v18 = vpack.c.bf16 %v61_v16, %v60_v15  ;;  %v109_v20 = vld [vmem:[#allocation5 + $0x198] sm:$0xff]  ;;  %v92_v21 = vld [vmem:[#allocation5 + $0x110] sm:$0xff]  ;;  %v79_v25 = vld [vmem:[#allocation5 + $0xa8] sm:$0xff]  ;;  %639 = vmatprep.subr.bf16.mxu0 %v638_v17 }
  0x2d   :  { %669 = vmatpush3.bf16.msra.mxu1 %v668_v13  ;;  %v670_v22 = vpack.c.bf16 %v109_v20, %v108_v19  ;;  %v93_v23 = vld [vmem:[#allocation5 + $0x118] sm:$0xff]  ;;  %v642_v27 = vpack.c.bf16 %v79_v25, %v78_v24  ;;  %v62_v28 = vld [vmem:[#allocation5 + $0x20] sm:$0xff]  ;;  %v63_v29 = vld [vmem:[#allocation5 + $0x28] sm:$0xff] }
  0x2e   :  { %v672_v26 = vpack.c.bf16 %v93_v23, %v92_v21  ;;  %v110_v30 = vld [vmem:[#allocation5 + $0x1a0] sm:$0xff]  ;;  %v111_v31 = vld [vmem:[#allocation5 + $0x1a8] sm:$0xff]  ;;  %v644_v34 = vpack.c.bf16 %v63_v29, %v62_v28  ;;  %v80_v36 = vld [vmem:[#allocation5 + $0xb0] sm:$0xff] }
  0x2f   :  { %671 = vmatprep.subr.bf16.mxu1 %v670_v22  ;;  %v94_v32 = vld [vmem:[#allocation5 + $0x120] sm:$0xff]  ;;  %v95_v33 = vld [vmem:[#allocation5 + $0x128] sm:$0xff]  ;;  %641 = vmatpush3.bf16.msra.mxu0 %v640_v18  ;;  %v674_v35 = vpack.c.bf16 %v111_v31, %v110_v30  ;;  %v81_v37 = vld [vmem:[#allocation5 + $0xb8] sm:$0xff] }
  0x30   :  { %v64_v38 = vld [vmem:[#allocation5 + $0x30] sm:$0xff]  ;;  %643 = vmatprep.subr.bf16.mxu0 %v642_v27  ;;  %v676_v39 = vpack.c.bf16 %v95_v33, %v94_v32  ;;  %v646_v40 = vpack.c.bf16 %v81_v37, %v80_v36  ;;  %v65_v41 = vld [vmem:[#allocation5 + $0x38] sm:$0xff]  ;;  %v82_v47 = vld [vmem:[#allocation5 + $0xc0] sm:$0xff] }
  0x31   :  { %673 = vmatpush3.bf16.msra.mxu1 %v672_v26  ;;  %v112_v42 = vld [vmem:[#allocation5 + $0x1b0] sm:$0xff]  ;;  %v113_v43 = vld [vmem:[#allocation5 + $0x1b8] sm:$0xff]  ;;  %v83_v48 = vld [vmem:[#allocation5 + $0xc8] sm:$0xff]  ;;  %v648_v49 = vpack.c.bf16 %v65_v41, %v64_v38 }
  0x32   :  { %675 = vmatprep.subr.bf16.mxu1 %v674_v35  ;;  %v678_v44 = vpack.c.bf16 %v113_v43, %v112_v42  ;;  %v96_v45 = vld [vmem:[#allocation5 + $0x130] sm:$0xff]  ;;  %v97_v46 = vld [vmem:[#allocation5 + $0x138] sm:$0xff]  ;;  %v114_v50 = vld [vmem:[#allocation5 + $0x1c0] sm:$0xff]  ;;  %v650_v53 = vpack.c.bf16 %v83_v48, %v82_v47 }
  0x33   :  { %645 = vmatpush3.bf16.msra.mxu0 %v644_v34  ;;  %v115_v51 = vld [vmem:[#allocation5 + $0x1c8] sm:$0xff]  ;;  %v680_v52 = vpack.c.bf16 %v97_v46, %v96_v45  ;;  %v66_v54 = vld [vmem:[#allocation5 + $0x40] sm:$0xff]  ;;  %v84_v59 = vld [vmem:[#allocation5 + $0xd0] sm:$0xff] }
  0x34   :  { %647 = vmatprep.subr.bf16.mxu0 %v646_v40  ;;  %v67_v55 = vld [vmem:[#allocation5 + $0x48] sm:$0xff]  ;;  %v98_v56 = vld [vmem:[#allocation5 + $0x140] sm:$0xff]  ;;  %v682_v57 = vpack.c.bf16 %v115_v51, %v114_v50  ;;  %v85_v60 = vld [vmem:[#allocation5 + $0xd8] sm:$0xff] }
  0x35   :  { %677 = vmatpush3.bf16.msra.mxu1 %v676_v39  ;;  %v99_v58 = vld [vmem:[#allocation5 + $0x148] sm:$0xff]  ;;  %v116_v61 = vld [vmem:[#allocation5 + $0x1d0] sm:$0xff]  ;;  %v117_v62 = vld [vmem:[#allocation5 + $0x1d8] sm:$0xff]  ;;  %v652_v63 = vpack.c.bf16 %v67_v55, %v66_v54  ;;  %v654_v1 = vpack.c.bf16 %v85_v60, %v84_v59 }
  0x36   :  { %679 = vmatprep.subr.bf16.mxu1 %v678_v44  ;;  %v684_v0 = vpack.c.bf16 %v99_v58, %v98_v56  ;;  %v68_v2 = vld [vmem:[#allocation5 + $0x50] sm:$0xff]  ;;  %v69_v3 = vld [vmem:[#allocation5 + $0x58] sm:$0xff]  ;;  %v686_v5 = vpack.c.bf16 %v117_v62, %v116_v61  ;;  %v86_v7 = vld [vmem:[#allocation5 + $0xe0] sm:$0xff] }
  0x37   :  { %649 = vmatpush3.bf16.msra.mxu0 %v648_v49  ;;  %v100_v4 = vld [vmem:[#allocation5 + $0x150] sm:$0xff]  ;;  %v101_v6 = vld [vmem:[#allocation5 + $0x158] sm:$0xff]  ;;  %v87_v8 = vld [vmem:[#allocation5 + $0xe8] sm:$0xff]  ;;  %v656_v11 = vpack.c.bf16 %v69_v3, %v68_v2 }
  0x38   :  { %651 = vmatprep.subr.bf16.mxu0 %v650_v53  ;;  %v118_v9 = vld [vmem:[#allocation5 + $0x1e0] sm:$0xff]  ;;  %v119_v10 = vld [vmem:[#allocation5 + $0x1e8] sm:$0xff]  ;;  %v688_v14 = vpack.c.bf16 %v101_v6, %v100_v4  ;;  %v658_v15 = vpack.c.bf16 %v87_v8, %v86_v7  ;;  %v88_v20 = vld [vmem:[#allocation5 + $0xf0] sm:$0xff] }
  0x39   :  { %681 = vmatpush3.bf16.msra.mxu1 %v680_v52  ;;  %v70_v12 = vld [vmem:[#allocation5 + $0x60] sm:$0xff]  ;;  %v47_v13 = vld [vmem:[#allocation2 + $0x8] sm:$0xff]  ;;  %v690_v19 = vpack.c.bf16 %v119_v10, %v118_v9  ;;  %v89_v21 = vld [vmem:[#allocation5 + $0xf8] sm:$0xff] }
  0x3a   :  { %683 = vmatprep.subr.bf16.mxu1 %v682_v57  ;;  %v71_v16 = vld [vmem:[#allocation5 + $0x68] sm:$0xff]  ;;  %v102_v17 = vld [vmem:[#allocation5 + $0x160] sm:$0xff]  ;;  %225 = vmatprep.mubr.f32.mxu0 %v47_v13  ;;  %v49_v22 = vld [vmem:[#allocation2 + $0x18] sm:$0xff]  ;;  %v662_v27 = vpack.c.bf16 %v89_v21, %v88_v20 }
  0x3b   :  { %653 = vmatpush3.bf16.msra.mxu0 %v652_v63  ;;  %v103_v18 = vld [vmem:[#allocation5 + $0x168] sm:$0xff]  ;;  %v120_v23 = vld [vmem:[#allocation5 + $0x1f0] sm:$0xff]  ;;  %v121_v24 = vld [vmem:[#allocation5 + $0x1f8] sm:$0xff]  ;;  %300 = vmatprep.mubr.f32.mxu1 %v49_v22  ;;  %v660_v25 = vpack.c.bf16 %v71_v16, %v70_v12 }
  0x3c   :  { %655 = vmatprep.subr.bf16.mxu0 %v654_v1  ;;  %v692_v26 = vpack.c.bf16 %v103_v18, %v102_v17  ;;  %v72_v28 = vld [vmem:[#allocation5 + $0x70] sm:$0xff]  ;;  %v73_v29 = vld [vmem:[#allocation5 + $0x78] sm:$0xff]  ;;  %v694_v31 = vpack.c.bf16 %v121_v24, %v120_v23  ;;  %v138_v33 = vld [vmem:[#allocation5 + $0x280] sm:$0xff] }
  0x3d   :  { %685 = vmatpush3.bf16.msra.mxu1 %v684_v0  ;;  %v104_v30 = vld [vmem:[#allocation5 + $0x170] sm:$0xff]  ;;  %v105_v32 = vld [vmem:[#allocation5 + $0x178] sm:$0xff]  ;;  %v139_v34 = vld [vmem:[#allocation5 + $0x288] sm:$0xff]  ;;  %v664_v35 = vpack.c.bf16 %v73_v29, %v72_v28 }
  0x3e   :  { %687 = vmatprep.subr.bf16.mxu1 %v686_v5  ;;  %v696_v36 = vpack.c.bf16 %v105_v32, %v104_v30  ;;  %v698_v37 = vpack.c.bf16 %v139_v34, %v138_v33  ;;  %v122_v38 = vld [vmem:[#allocation5 + $0x200] sm:$0xff]  ;;  %v123_v39 = vld [vmem:[#allocation5 + $0x208] sm:$0xff]  ;;  %v140_v40 = vld [vmem:[#allocation5 + $0x290] sm:$0xff]  ;;  %v823_v34 = vmov 0.0  }
  0x3f   :  { %657 = vmatpush3.bf16.msra.mxu0 %v656_v11  ;;  %v141_v41 = vld [vmem:[#allocation5 + $0x298] sm:$0xff]  ;;  %v46_v42 = vld [vmem:[#allocation2] sm:$0xff]  ;;  %v700_v43 = vpack.c.bf16 %v123_v39, %v122_v38  ;;  %v48_v44 = vld [vmem:[#allocation2 + $0x10] sm:$0xff] }
  0x40   :  { %659 = vmatprep.subr.bf16.mxu0 %v658_v15  ;;  %v702_v45 = vpack.c.bf16 %v141_v41, %v140_v40  ;;  %v124_v46 = vld [vmem:[#allocation5 + $0x210] sm:$0xff]  ;;  %v125_v47 = vld [vmem:[#allocation5 + $0x218] sm:$0xff]  ;;  %v142_v48 = vld [vmem:[#allocation5 + $0x2a0] sm:$0xff] }
  0x41   :  { %689 = vmatpush3.bf16.msra.mxu1 %v688_v14  ;;  %v143_v49 = vld [vmem:[#allocation5 + $0x2a8] sm:$0xff]  ;;  %v53_v50 = vld [vmem:[#allocation2 + $0x38] sm:$0xff]  ;;  %v704_v52 = vpack.c.bf16 %v125_v47, %v124_v46  ;;  %v52_v53 = vld [vmem:[#allocation2 + $0x30] sm:$0xff] }
  0x42   :  { %691 = vmatprep.subr.bf16.mxu1 %v690_v19  ;;  %v55_v51 = vld [vmem:[#allocation2 + $0x48] sm:$0xff]  ;;  %v388_v54 = vld [vmem:[%s903_s0] sm:$0xff]  ;;  %v706_v55 = vpack.c.bf16 %v143_v49, %v142_v48  ;;  %v126_v56 = vld [vmem:[#allocation5 + $0x220] sm:$0xff] }
  0x43   :  { %661 = vmatpush3.bf16.msra.mxu0 %v660_v25  ;;  %v127_v57 = vld [vmem:[#allocation5 + $0x228] sm:$0xff]  ;;  %v54_v58 = vld [vmem:[#allocation2 + $0x40] sm:$0xff]  ;;  %v144_v59 = vld [vmem:[#allocation5 + $0x2b0] sm:$0xff]  ;;  %391 = vperm.xlu0 %743, %v388_v54  }
  0x44   :  { %663 = vmatprep.subr.bf16.mxu0 %v662_v27  ;;  %v145_v60 = vld [vmem:[#allocation5 + $0x2b8] sm:$0xff]  ;;  %v51_v61 = vld [vmem:[#allocation2 + $0x28] sm:$0xff]  ;;  %v708_v63 = vpack.c.bf16 %v127_v57, %v126_v56  ;;  %v128_v1 = vld [vmem:[#allocation5 + $0x230] sm:$0xff] }
  0x45   :  { %693 = vmatpush3.bf16.msra.mxu1 %v692_v26  ;;  %v389_v62 = vld [vmem:[%s903_s0 + $0x8] sm:$0xff]  ;;  %v710_v0 = vpack.c.bf16 %v145_v60, %v144_v59  ;;  %v146_v3 = vld [vmem:[#allocation5 + $0x2c0] sm:$0xff]  ;;  %v147_v4 = vld [vmem:[#allocation5 + $0x2c8] sm:$0xff] }
  0x46   :  { %695 = vmatprep.subr.bf16.mxu1 %v694_v31  ;;  %v129_v2 = vld [vmem:[#allocation5 + $0x238] sm:$0xff]  ;;  %v714_v6 = vpack.c.bf16 %v147_v4, %v146_v3  ;;  %v130_v7 = vld [vmem:[#allocation5 + $0x240] sm:$0xff]  ;;  %v131_v8 = vld [vmem:[#allocation5 + $0x248] sm:$0xff]  ;;  %v386_v31 = vlaneseq }
  0x47   :  { %665 = vmatpush3.bf16.msra.mxu0 %v664_v35  ;;  %394 = vperm.xlu0 %743, %v389_v62   ;;  %v712_v5 = vpack.c.bf16 %v129_v2, %v128_v1  ;;  %v148_v9 = vld [vmem:[#allocation5 + $0x2d0] sm:$0xff]  ;;  %v149_v10 = vld [vmem:[#allocation5 + $0x2d8] sm:$0xff]  ;;  %v716_v11 = vpack.c.bf16 %v131_v8, %v130_v7  ;;  %v150_v15 = vld [vmem:[#allocation5 + $0x2e0] sm:$0xff] }
  0x48   :  { %699 = vmatprep.subr.bf16.mxu0 %v698_v37  ;;  %v718_v12 = vpack.c.bf16 %v149_v10, %v148_v9  ;;  %v132_v13 = vld [vmem:[#allocation5 + $0x250] sm:$0xff]  ;;  %v133_v14 = vld [vmem:[#allocation5 + $0x258] sm:$0xff]  ;;  %v151_v16 = vld [vmem:[#allocation5 + $0x2e8] sm:$0xff]  ;;  %v387_v32 = vand.u32 127, %v386_v31 }
  0x49   :  { %697 = vmatpush3.bf16.msra.mxu1 %v696_v36  ;;  %v720_v17 = vpack.c.bf16 %v133_v14, %v132_v13  ;;  %v722_v18 = vpack.c.bf16 %v151_v16, %v150_v15  ;;  %v134_v19 = vld [vmem:[#allocation5 + $0x260] sm:$0xff]  ;;  %v135_v20 = vld [vmem:[#allocation5 + $0x268] sm:$0xff]  ;;  %v152_v21 = vld [vmem:[#allocation5 + $0x2f0] sm:$0xff] }
  0x4a   :  { %226 = vmatmul.mubr.f32.vlgmr.msra.gmra.mrb[0].mxu0 %v46_v42  ;;  %v153_v22 = vld [vmem:[#allocation5 + $0x2f8] sm:$0xff]  ;;  %v724_v23 = vpack.c.bf16 %v135_v20, %v134_v19  ;;  %v136_v25 = vld [vmem:[#allocation5 + $0x270] sm:$0xff]  ;;  %v50_v28 = vld [vmem:[#allocation2 + $0x20] sm:$0xff] }
  0x4b   :  { %701 = vmatpush3.bf16.msra.mxu0 %v700_v43  ;;  %230 = vmatprep.mubr.f32.mxu0 %v53_v50  ;;  %v726_v24 = vpack.c.bf16 %v153_v22, %v152_v21  ;;  %v137_v26 = vld [vmem:[#allocation5 + $0x278] sm:$0xff]  ;;  %v56_v30 = vld [vmem:[#allocation2 + $0x50] sm:$0xff] }
  0x4c   :  { %301 = vmatmul.mubr.f32.vlgmr.msra.gmra.mrb[0].mxu1 %v48_v44  ;;  %703 = vmatprep.subr.bf16.mxu0 %v702_v45  ;;  %v728_v27 = vpack.c.bf16 %v137_v26, %v136_v25  ;;  %v57_v29 = vld [vmem:[#allocation2 + $0x58] sm:$0xff]  ;;  %v504_v39 = vld [vmem:[%s906_s3] ss:$0 sm:$0xff]  ;;  %s824_s3 = smov [#allocation7]  }
  0x4d   :  { %305 = vmatprep.mubr.f32.mxu1 %v55_v51  ;;  %s491_s20 = sshll.u32 %s824_s3, 4  ;;  %s492_s20 = int_to_ptr.vmem [resolvable:$true] %s491_s20 }
  0x4e   :  { %231 = vmatmul.mubr.f32.gmra.mrb[2].mxu0 %v52_v53  ;;  %s788_s21 = scalar_lea.vmem %s492_s20, 256  ;;  %p793_p3 = scmp.lt.s32.totalorder %s492_s20, %s492_s20 }
  0x4f   :  { %705 = vmatpush3.bf16.msra.mxu0 %v704_v52  ;;  %375 = vmatprep.mubr.f32.mxu0 %v51_v61  ;;  %p789_p2 = scmp.ne.s32.totalorder %s492_s20, %s788_s21  ;;  %p794_p4 = scmp.lt.s32.totalorder %s788_s21, %s788_s21 }
  0x50   :  { %306 = vmatmul.mubr.f32.gmra.mrb[2].mxu1 %v54_v58  ;;  %707 = vmatprep.subr.bf16.mxu0 %v706_v55 }
  0x51   :  { %p795_p5 = por %p794_p4, %p793_p3 }
  0x53   :  { %709 = vmatpush3.bf16.msra.mxu0 %v708_v63  ;;  %p796_p6 = pnand %p795_p5, %p789_p2 }
  0x54   :  { %711 = vmatprep.subr.bf16.mxu0 %v710_v0 }
  0x57   :  { %713 = vmatpush3.bf16.msra.mxu0 %v712_v5 }
  0x58   :  { %715 = vmatprep.subr.bf16.mxu0 %v714_v6 }
  0x5b   :  { %717 = vmatpush3.bf16.msra.mxu0 %v716_v11 }
  0x5c   :  { %719 = vmatprep.subr.bf16.mxu0 %v718_v12 }
  0x5f   :  { %721 = vmatpush3.bf16.msra.mxu0 %v720_v17 }
  0x60   :  { %723 = vmatprep.subr.bf16.mxu0 %v722_v18 }
  0x63   :  { %725 = vmatpush3.bf16.msra.mxu0 %v724_v23 }
  0x64   :  { %727 = vmatprep.subr.bf16.mxu0 %v726_v24 }
  0x67   :  { %729 = vmatpush3.bf16.msra.mxu0 %v728_v27 }
  0x6a   :  { %376 = vmatmul.mubr.f32.vlgmr.msra.gmra.mrb[4].mxu0 %v50_v28 }
  0x6b   :  { %380 = vmatprep.mubr.f32.mxu0 %v57_v29 }
  0x6e   :  { %381 = vmatmul.mubr.f32.gmra.mrb[6].mxu0 %v56_v30 }
  0xc2   :  { %v392_v33 = vpop.permute.xlu0 %391 }
  0xc3   :  { %vm396_vm1 = vcmp.eq.s32.totalorder %v392_v33, %v387_v32 }
  0xc4   :  { %v505_v35 = vsel %vm396_vm1, 1.0, %v823_v34 }
  0xc5   :  { %631 = vmatprep.mubr.msk.f32.mxu1 %vm402_vm0, %v505_v35 }
  0xc6   :  { %v395_v36 = vpop.permute.xlu0 %394 }
  0xc7   :  { %vm397_vm2 = vcmp.eq.s32.totalorder %v395_v36, %v387_v32 }
  0xc8   :  { %v506_v37 = vsel %vm397_vm2, 1.0, %v823_v34 }
 0x11d   :  { %v541_v38 = vpop.f32.mrb[0].mxu0 }
 0x11e   :  { %v542_v40 = vpop.f32.mrb[1].mxu0 }
 0x11f   :  { %v579_v41 = vpop.f32.mrb[0].mxu1  ;;  %v543_v42 = vadd.f32 %v542_v40, %v541_v38 }
 0x120   :  { %v580_v43 = vpop.f32.mrb[1].mxu1 }
 0x121   :  { %v581_v44 = vadd.f32 %v580_v43, %v579_v41  ;;  %v228_v45 = vadd.f32 %v543_v42, %v504_v39  ;;  %v544_v46 = vpop.f32.mrb[2].mxu0 }
 0x122   :  { %v545_v47 = vpop.f32.mrb[3].mxu0 }
 0x123   :  { %v582_v48 = vpop.f32.mrb[2].mxu1  ;;  %v303_v49 = vadd.f32 %v581_v44, %v228_v45  ;;  %v546_v50 = vadd.f32 %v545_v47, %v544_v46 }
 0x124   :  { %v583_v51 = vpop.f32.mrb[3].mxu1 }
 0x125   :  { %v584_v52 = vadd.f32 %v583_v51, %v582_v48  ;;  %v233_v53 = vadd.f32 %v546_v50, %v504_v39 }
 0x127   :  { %v308_v54 = vadd.f32 %v584_v52, %v233_v53 }
 0x13d   :  { %v617_v55 = vpop.f32.mrb[4].mxu0 }
 0x13e   :  { %v618_v56 = vpop.f32.mrb[5].mxu0 }
 0x13f   :  { %v619_v57 = vadd.f32 %v618_v56, %v617_v55 }
 0x141   :  { %v378_v58 = vadd.f32 %v619_v57, %v303_v49  ;;  %v620_v59 = vpop.f32.mrb[6].mxu0 }
 0x142   :  { %v621_v60 = vpop.f32.mrb[7].mxu0 }
 0x143   :  { %v622_v61 = vadd.f32 %v621_v60, %v620_v59 }
 0x145   :  { %v383_v62 = vadd.f32 %v622_v61, %v308_v54 }
 0x147   :  { %v730_v63 = vpack.c.bf16 %v383_v62, %v378_v58 }
 0x149   :  { %731 = vmatprep.subr.bf16.mxu1 %v730_v63 }
 0x14a   :  { %733 = vmatpush3.bf16.msra.mxu1 %v730_v63 }
 0x14d   :  { %632 = vmatmul.mubr.msk.f32.vlgmr.msra.gmra.mrb[4].mxu1 %vm402_vm0, %v506_v37 }
 0x220   :  { %v633_v0 = vpop.f32.mrb[4].mxu1 }
 0x221   :  { %485 = vst [vmem:[#allocation7 + $0x8] sm:$0xff] %v633_v0  ;;  %v475_v1 = vpop.f32.mrb[5].mxu1 }
 0x222   :  { %484 = vst [vmem:[#allocation7] sm:$0xff] %v475_v1 }
 0x223   :  { %799 = shalt.err (!%p796_p6)
}
 0x224   :  { %s800_s24 = scalar_lea.hbm %s907_s4, 256 }
 0x225   :  { %p801_p7 = scmp.ne.s32.totalorder %s907_s4, %s800_s24  ;;  %p804_p8 = scmp.lt.u32.totalorder %s800_s24, %s907_s4 }
 0x227   :  { %p806_p9 = pnand %p804_p8, %p801_p7 }
 0x229   :  { %809 = shalt.err (!%p806_p9)
}
 0x22a   :  { %497 = dma.vmem_to_hbm [thread:$0]  %s492_s20, 256, %s907_s4, [#allocation4], %s820_s1, %s820_s1, %s821_s13  }
 0x22b   :  { %814 = dma.done.wait [#allocation4], 256  }
 0x22c   :  { %815 = vsyncadd [#allocation4], 4294967040 }
 0x22d   :  { %501 = vsyncpa [#allocation3], 1 }
 0x22e   :  { %502 = vsyncpa [#allocation6], 1 }
 0x22f   :  { %503 = vsyncpa [#allocation4], 1 }

</bundles_post_ra>
